<compile_context>
chip_gen: v5e
topology: v5e:2x2
jax: 0.10.0
libtpu: 0.0.40
codegen_flags: <defaults>
</compile_context>

<pallas_src>
import functools

import jax
import jax.numpy as jnp
from jax.experimental import pallas as pl
from jax.experimental.pallas import tpu as pltpu


def _round_up(n, m):
    return pl.cdiv(n, m) * m


def gating_kernel(x_ref, w1_ref, b1_ref, w2_ref, b2_ref, out_ref):
    # x arrives f32; cast to bf16 on the VPU (fused -> no separate XLA cast pass).
    x = x_ref[...].astype(jnp.bfloat16)                                 # (TB, D)
    # Linear 1 (bf16 MXU, f32 accumulate) + bias + ReLU in f32.
    h = jnp.dot(x, w1_ref[...], preferred_element_type=jnp.float32)
    h = jnp.maximum(h + b1_ref[...], 0.0)                               # (TB, H) f32
    # TODO(synk): nn.Dropout(0.1) is identity in eval mode; training-mode RNG dropout
    #             (pltpu.prng_seed + prng_random_bits masking of h) is not implemented.
    # Linear 2 (bf16 MXU, f32 accumulate) + padded bias.
    # NOTE: logits MUST stay f32 — the -1e30 fake-expert bias relies on f32 range so
    #       exp() underflows to exactly 0; in bf16 it would overflow to -inf.
    logits = jnp.dot(h.astype(jnp.bfloat16), w2_ref[...],
                     preferred_element_type=jnp.float32) + b2_ref[...]  # (TB, E_PAD)
    # Numerically-stable softmax over the (padded) expert axis; padded lanes vanish.
    m = jnp.max(logits, axis=-1, keepdims=True)
    e = jnp.exp(logits - m)
    s = jnp.sum(e, axis=-1, keepdims=True)
    w = e * pl.reciprocal(s, approx=True)                               # (TB, E_PAD) f32
    # Transposed, sublane-packed store: keep only the first E_OUT (=round_up(E,8))
    # expert rows -> (E_OUT, TB).  Transpose is XLU work (free slot here); the store
    # is lane-dense along batch and ~16x smaller than the (TB, 128) f32 slab.
    e_out = out_ref.shape[0]
    out_ref[...] = w.T[:e_out, :].astype(out_ref.dtype)


def _vmem_bytes(tb, d, h, e_pad, e_out):
    """Rough per-step VMEM footprint used to cap the batch tile."""
    x_db = 2 * tb * d * 4                        # f32 input tile, double-buffered
    out_db = 2 * e_out * tb * 4                  # f32 transposed out tile, double-buffered
    interm = tb * h * 4 + 2 * tb * e_pad * 4     # h + logits/exp temporaries (f32)
    resident = 2 * (d * h * 2 + h * e_pad * 2 + h * 4 + e_pad * 4)   # weights/biases
    return x_db + out_db + interm + resident


@functools.partial(jax.jit, static_argnames=("block_b",))
def gating_forward(x, w1, b1, w2, b2, *, block_b=1024):
    """x: (B, D) f32; w1: (D, H); b1: (H,)/(1,H); w2: (H, E); b2: (E,)/(1,E).

    Weights are stored transposed vs. PyTorch (in_features, out_features).
    Returns softmax gating weights (B, E) in f32.
    """
    B, D = x.shape
    H = w1.shape[1]
    E = w2.shape[1]

    E_PAD = _round_up(E, 128)     # lane width of the in-kernel softmax
    E_OUT = _round_up(E, 8)       # sublane-packed expert rows actually stored

    # --- batch tile: multiple of 128 (lane-dense transposed store), >=2 grid steps
    #     when B allows it (v7x has 2 TensorCores), capped by block_b and VMEM. ---
    block_b = _round_up(max(block_b, 128), 128)
    TB = min(block_b, _round_up(pl.cdiv(B, 2), 128))

    try:
        vmem_cap = pltpu.get_tpu_info().vmem_capacity_bytes
    except Exception:
        vmem_cap = 64 * 1024 * 1024              # v7x worst case
    budget = (vmem_cap * 3) // 4                 # headroom for Mosaic scratch
    while TB > 128 and _vmem_bytes(TB, D, H, E_PAD, E_OUT) > budget:
        TB = max(128, _round_up(TB // 2, 128))
    vmem_limit = int(max(32 * 1024 * 1024, min(budget, vmem_cap - (4 << 20))))

    B_PAD = _round_up(B, TB)
    # Pad only for ragged batches (no-op otherwise); the f32->bf16 cast is in-kernel.
    x_p = jnp.pad(x, ((0, B_PAD - B), (0, 0))) if B_PAD != B else x

    w1_bf = w1.astype(jnp.bfloat16)
    w2_bf = jnp.pad(w2.astype(jnp.bfloat16), ((0, 0), (0, E_PAD - E)))
    b1_f = b1.reshape(1, H).astype(jnp.float32)
    # Fake experts get -1e30 so exp(logit - max) == 0 exactly (f32 logits only!).
    b2_f = jnp.pad(b2.reshape(1, E).astype(jnp.float32),
                   ((0, 0), (0, E_PAD - E)), constant_values=-1e30)

    grid = (B_PAD // TB,)
    out = pl.pallas_call(
        gating_kernel,
        out_shape=jax.ShapeDtypeStruct((E_OUT, B_PAD), jnp.float32),
        grid=grid,
        in_specs=[
            pl.BlockSpec((TB, D), lambda i: (i, 0)),        # x tile marches over batch
            pl.BlockSpec((D, H), lambda i: (0, 0)),         # weights stay VMEM-resident
            pl.BlockSpec((1, H), lambda i: (0, 0)),
            pl.BlockSpec((H, E_PAD), lambda i: (0, 0)),
            pl.BlockSpec((1, E_PAD), lambda i: (0, 0)),
        ],
        out_specs=pl.BlockSpec((E_OUT, TB), lambda i: (0, i)),
        compiler_params=pltpu.CompilerParams(
            # batch axis is independent -> shard across v7x's 2 TensorCores
            dimension_semantics=("parallel",),
            vmem_limit_bytes=vmem_limit,
        ),
    )(x_p, w1_bf, b1_f, w2_bf, b2_f)

    # (E_OUT, B_PAD) -> (B, E): tiny slice + transpose (16x less data than re-reading
    # the old (B_PAD, 128) slab).
    return out[:E, :B].T


def make_params(key, input_dim, num_experts, hidden_dim=128):
    """Deterministic parameter init mimicking the PyTorch module's shapes."""
    k1, k2, k3, k4 = jax.random.split(key, 4)
    # PyTorch Linear stores weight as (out, in); we keep (in, out) for x @ W.
    w1 = jax.random.normal(k1, (input_dim, hidden_dim), jnp.float32) * 0.05
    b1 = jax.random.normal(k2, (1, hidden_dim), jnp.float32) * 0.01
    w2 = jax.random.normal(k3, (hidden_dim, num_experts), jnp.float32) * 0.05
    b2 = jax.random.normal(k4, (1, num_experts), jnp.float32) * 0.01
    return w1, b1, w2, b2


if __name__ == "__main__":
    key = jax.random.PRNGKey(0)
    # Ragged batch (padding path) with >=2 grid steps: B=200 -> TB=128, B_PAD=256, grid=(2,).
    B, input_dim, hidden_dim, num_experts = 200, 32, 128, 4

    kx, kp = jax.random.split(key)
    x = jax.random.normal(kx, (B, input_dim), jnp.float32)
    w1, b1, w2, b2 = make_params(kp, input_dim, num_experts, hidden_dim)

    weights = gating_forward(x, w1, b1, w2, b2)
    weights = jax.block_until_ready(weights)

    # Reference in plain JAX with the same bf16-matmul / f32-accumulate recipe
    # (eval-mode dropout == identity).
    h_ref = jnp.maximum(
        jnp.dot(x.astype(jnp.bfloat16), w1.astype(jnp.bfloat16),
                preferred_element_type=jnp.float32) + b1, 0.0)
    logits_ref = jnp.dot(h_ref.astype(jnp.bfloat16), w2.astype(jnp.bfloat16),
                         preferred_element_type=jnp.float32) + b2
    ref = jax.nn.softmax(logits_ref, axis=-1)

    assert weights.shape == (B, num_experts)
    assert bool(jnp.all(jnp.isfinite(weights)))
    assert jnp.allclose(weights, ref, atol=5e-3, rtol=5e-3), \
        float(jnp.max(jnp.abs(weights - ref)))
    assert jnp.allclose(jnp.sum(weights, axis=-1), 1.0, atol=1e-2)

    print("KERNEL_OK")
</pallas_src>

<mosaic_0001>
module attributes {stable_mosaic.version = 11 : i64} {
  func.func @gating_kernel(%arg0: i32, %arg1: memref<128x32xf32, #tpu.memory_space<vmem>>, %arg2: memref<32x128xbf16, #tpu.memory_space<vmem>>, %arg3: memref<1x128xf32, #tpu.memory_space<vmem>>, %arg4: memref<128x128xbf16, #tpu.memory_space<vmem>>, %arg5: memref<1x128xf32, #tpu.memory_space<vmem>>, %arg6: memref<8x128xf32, #tpu.memory_space<vmem>>) attributes {dimension_semantics = [#tpu.dimension_semantics<parallel>], iteration_bounds = array<i64: 2>, scalar_prefetch = 0 : i64, scratch_operands = 0 : i64, tpu.core_type = #tpu.core_type<tc>, window_params = [{transform_indices = @transform_0, window_bounds = array<i64: 128, 32>}, {pipeline_mode = #tpu.pipeline_mode<synchronous>, transform_indices = @transform_1, window_bounds = array<i64: 32, 128>}, {pipeline_mode = #tpu.pipeline_mode<synchronous>, transform_indices = @transform_2, window_bounds = array<i64: 1, 128>}, {pipeline_mode = #tpu.pipeline_mode<synchronous>, transform_indices = @transform_3, window_bounds = array<i64: 128, 128>}, {pipeline_mode = #tpu.pipeline_mode<synchronous>, transform_indices = @transform_4, window_bounds = array<i64: 1, 128>}, {transform_indices = @transform_5, window_bounds = array<i64: 8, 128>}]} {
    %c0 = arith.constant 0 : index
    %c0_0 = arith.constant 0 : index
    %0 = vector.load %arg1[%c0, %c0_0] : memref<128x32xf32, #tpu.memory_space<vmem>>, vector<128x32xf32>
    %1 = arith.truncf %0 : vector<128x32xf32> to vector<128x32xbf16>
    %c0_1 = arith.constant 0 : index
    %c0_2 = arith.constant 0 : index
    %2 = vector.load %arg2[%c0_1, %c0_2] : memref<32x128xbf16, #tpu.memory_space<vmem>>, vector<32x128xbf16>
    %cst = arith.constant dense<0.000000e+00> : vector<128x128xf32>
    %3 = tpu.matmul %1, %2, %cst {dimension_numbers = #tpu.dot_dimension_numbers<[1], [0], [0], [1], [0, 0, 1, 1], [], []>} : vector<128x32xbf16>, vector<32x128xbf16>, vector<128x128xf32> -> vector<128x128xf32>
    %c0_3 = arith.constant 0 : index
    %c0_4 = arith.constant 0 : index
    %4 = vector.load %arg3[%c0_3, %c0_4] : memref<1x128xf32, #tpu.memory_space<vmem>>, vector<1x128xf32>
    %5 = vector.broadcast %4 : vector<1x128xf32> to vector<128x128xf32>
    %6 = arith.addf %3, %5 : vector<128x128xf32>
    %cst_5 = arith.constant 0.000000e+00 : f32
    %7 = vector.broadcast %cst_5 : f32 to vector<128x128xf32>
    %8 = arith.maximumf %6, %7 : vector<128x128xf32>
    %9 = arith.truncf %8 : vector<128x128xf32> to vector<128x128xbf16>
    %c0_6 = arith.constant 0 : index
    %c0_7 = arith.constant 0 : index
    %10 = vector.load %arg4[%c0_6, %c0_7] : memref<128x128xbf16, #tpu.memory_space<vmem>>, vector<128x128xbf16>
    %cst_8 = arith.constant dense<0.000000e+00> : vector<128x128xf32>
    %11 = tpu.matmul %9, %10, %cst_8 {dimension_numbers = #tpu.dot_dimension_numbers<[1], [0], [0], [1], [0, 0, 1, 1], [], []>} : vector<128x128xbf16>, vector<128x128xbf16>, vector<128x128xf32> -> vector<128x128xf32>
    %c0_9 = arith.constant 0 : index
    %c0_10 = arith.constant 0 : index
    %12 = vector.load %arg5[%c0_9, %c0_10] : memref<1x128xf32, #tpu.memory_space<vmem>>, vector<1x128xf32>
    %13 = vector.broadcast %12 : vector<1x128xf32> to vector<128x128xf32>
    %14 = arith.addf %11, %13 : vector<128x128xf32>
    %cst_11 = arith.constant dense<0xFF800000> : vector<128xf32>
    %15 = vector.multi_reduction <maximumf>, %14, %cst_11 [1] : vector<128x128xf32> to vector<128xf32>
    %16 = vector.shape_cast %15 : vector<128xf32> to vector<128x1xf32>
    %17 = vector.broadcast %16 : vector<128x1xf32> to vector<128x128xf32>
    %18 = arith.subf %14, %17 : vector<128x128xf32>
    %19 = math.exp %18 : vector<128x128xf32>
    %cst_12 = arith.constant dense<0.000000e+00> : vector<128xf32>
    %20 = vector.multi_reduction <add>, %19, %cst_12 [1] : vector<128x128xf32> to vector<128xf32>
    %21 = vector.shape_cast %20 : vector<128xf32> to vector<128x1xf32>
    %22 = tpu.reciprocal %21 {approx = true} : vector<128x1xf32> -> vector<128x1xf32>
    %23 = vector.broadcast %22 : vector<128x1xf32> to vector<128x128xf32>
    %24 = arith.mulf %19, %23 : vector<128x128xf32>
    %25 = tpu.transpose %24, [1, 0] : vector<128x128xf32> -> vector<128x128xf32>
    %26 = vector.extract_strided_slice %25 {offsets = [0, 0], sizes = [8, 128], strides = [1, 1]} : vector<128x128xf32> to vector<8x128xf32>
    %c0_13 = arith.constant 0 : index
    %c0_14 = arith.constant 0 : index
    %27 = vector.load %arg6[%c0_13, %c0_14] : memref<8x128xf32, #tpu.memory_space<vmem>>, vector<8x128xf32>
    tpu.vector_store %arg6[%c0_13, %c0_14], %26 {strides = array<i32>} : memref<8x128xf32, #tpu.memory_space<vmem>>, vector<8x128xf32>,
    return
  }
  func.func @transform_0(%arg0: i32) -> (i32, i32) {
    %c0_i32 = arith.constant 0 : i32
    %c0_i32_0 = arith.constant 0 : i32
    return %arg0, %c0_i32 : i32, i32
  }
  func.func @transform_1(%arg0: i32) -> (i32, i32) {
    %c0_i32 = arith.constant 0 : i32
    %c0_i32_0 = arith.constant 0 : i32
    %c0_i32_1 = arith.constant 0 : i32
    return %c0_i32, %c0_i32_0 : i32, i32
  }
  func.func @transform_2(%arg0: i32) -> (i32, i32) {
    %c0_i32 = arith.constant 0 : i32
    %c0_i32_0 = arith.constant 0 : i32
    %c0_i32_1 = arith.constant 0 : i32
    return %c0_i32, %c0_i32_0 : i32, i32
  }
  func.func @transform_3(%arg0: i32) -> (i32, i32) {
    %c0_i32 = arith.constant 0 : i32
    %c0_i32_0 = arith.constant 0 : i32
    %c0_i32_1 = arith.constant 0 : i32
    return %c0_i32, %c0_i32_0 : i32, i32
  }
  func.func @transform_4(%arg0: i32) -> (i32, i32) {
    %c0_i32 = arith.constant 0 : i32
    %c0_i32_0 = arith.constant 0 : i32
    %c0_i32_1 = arith.constant 0 : i32
    return %c0_i32, %c0_i32_0 : i32, i32
  }
  func.func @transform_5(%arg0: i32) -> (i32, i32) {
    %c0_i32 = arith.constant 0 : i32
    %c0_i32_0 = arith.constant 0 : i32
    return %c0_i32, %arg0 : i32, i32
  }
}

</mosaic_0001>

<bundles_post_ra>
// kernel: gating_forward.1
= control target key start
LH: loop header
LB: loop body
LE: loop exit
PB: predicated region body
PF: predicated region fallthrough
CT: control target
= control target key end

     0   :  { %s905_s18 = smov 0   ;;  %s1097_s0 = inlined_call_operand.vmem [shape: f32[256,32], index: 0, kind: input, shape index: {}]   ;;  %s1098_s1 = inlined_call_operand.vmem [shape: bf16[32,128], index: 1, kind: input, shape index: {}]   ;;  %s1099_s2 = inlined_call_operand.vmem [shape: f32[1,128], index: 2, kind: input, shape index: {}]   ;;  %s1100_s3 = inlined_call_operand.vmem [shape: bf16[128,128], index: 3, kind: input, shape index: {}]   ;;  %s1101_s4 = inlined_call_operand.vmem [shape: f32[1,128], index: 4, kind: input, shape index: {}]   ;;  %s1102_s5 = inlined_call_operand.vmem [shape: f32[8,256], index: 5, kind: output, shape index: {}]  }
   0x1 LB: > { %s911_s19 = sadd.s32 4294967295, %s873_s18   ;;  %p719_p0 = scmp.ge.s32.totalorder %s873_s18, 1  ;;  %s873_s18 = sphi %s905_s18, %s15_s18  }
   0x2   : > { %p188_p1 = scmp.lt.s32.totalorder %s873_s18, 3 }
   0x4   : > { %p189_p2 = pnand %p719_p0, %p188_p1 }
   0x5   : > { %s720_s22 = sshll.u32 (!%p189_p2), %s911_s19, 4  ;;  %p221_p4 = scmp.lt.s32.totalorder (!%p189_p2), %s911_s19, 1 }
   0x6   : > { %192 = sbr.rel (%p189_p2) target bundleno = 720 (0x2d0), region = 40  ;;  %p216_p3 = scmp.lt.s32.totalorder (!%p189_p2), %s720_s22, 31 }
   0xb   : > { %v774_v0 = vld [vmem:[%s1098_s1 + $0x8] sm:$0xff]  ;;  %v773_v1 = vld [vmem:[%s1098_s1] sm:$0xff]  ;;  %s1104_s22 = smov (!%p216_p3, %s720_s22), 31  ;;  %vm270_vm0 = vcmask 261120   ;;  %v782_v14 = vld [vmem:[%s1100_s3 + $0x38] sm:$0xff]  ;;  %s1106_s19 = smov (!%p221_p4, %s911_s19), 1 }
   0xc   : > { %301 = vmatpush.bf16.msra.mxu0 %v774_v0  ;;  %783 = vmatpush.bf16.msra.mxu3 %v774_v0  ;;  %s721_s25 = sshll.u32 %s1104_s22, 3  ;;  %v781_v15 = vld [vmem:[%s1100_s3 + $0x30] sm:$0xff]  ;;  %v780_v16 = vld [vmem:[%s1100_s3 + $0x28] sm:$0xff]  ;;  %v779_v22 = vld [vmem:[%s1100_s3 + $0x20] sm:$0xff]  ;;  %s722_s26 = sshll.u32 %s1106_s19, 3 }
   0xd   : > { %s925_s28 = scalar_lea.vmem %s1097_s0, %s721_s25  ;;  %436 = vmatpush.bf16.msra.mxu1 %v782_v14  ;;  %785 = vmatpush.bf16.msra.mxu2 %v782_v14  ;;  %v778_v30 = vld [vmem:[%s1100_s3 + $0x18] sm:$0xff]  ;;  %v777_v31 = vld [vmem:[%s1100_s3 + $0x10] sm:$0xff]  ;;  %v776_v32 = vld [vmem:[%s1100_s3 + $0x8] sm:$0xff]  ;;  %s224_s29 = scalar_lea.vmem %s1102_s5, %s722_s26 }
   0xe   : > { %v226_v2 = vld [vmem:[%s925_s28] sm:$0xff]  ;;  %v227_v3 = vld [vmem:[%s925_s28 + $0x8] sm:$0xff]  ;;  %v228_v5 = vld [vmem:[%s925_s28 + $0x10] sm:$0xff] }
   0xf   : > { %v242_v4 = vpack.c.bf16 %v227_v3, %v226_v2  ;;  %v229_v6 = vld [vmem:[%s925_s28 + $0x18] sm:$0xff]  ;;  %v230_v8 = vld [vmem:[%s925_s28 + $0x20] sm:$0xff]  ;;  %v231_v9 = vld [vmem:[%s925_s28 + $0x28] sm:$0xff] }
  0x10   : > { %302 = vmatpush.bf16.msra.mxu0 %v773_v1  ;;  %784 = vmatpush.bf16.msra.mxu3 %v773_v1  ;;  %v243_v7 = vpack.c.bf16 %v229_v6, %v228_v5  ;;  %v244_v10 = vpack.c.bf16 %v231_v9, %v230_v8  ;;  %v236_v11 = vld [vmem:[%s925_s28 + $0x50] sm:$0xff]  ;;  %v237_v12 = vld [vmem:[%s925_s28 + $0x58] sm:$0xff]  ;;  %v238_v19 = vld [vmem:[%s925_s28 + $0x60] sm:$0xff] }
  0x11   : > { %v247_v13 = vpack.c.bf16 %v237_v12, %v236_v11  ;;  %437 = vmatpush.bf16.msra.mxu1 %v781_v15  ;;  %786 = vmatpush.bf16.msra.mxu2 %v781_v15  ;;  %v232_v17 = vld [vmem:[%s925_s28 + $0x30] sm:$0xff]  ;;  %v233_v18 = vld [vmem:[%s925_s28 + $0x38] sm:$0xff]  ;;  %v239_v20 = vld [vmem:[%s925_s28 + $0x68] sm:$0xff] }
  0x12   : > { %v245_v21 = vpack.c.bf16 %v233_v18, %v232_v17  ;;  %v248_v23 = vpack.c.bf16 %v239_v20, %v238_v19  ;;  %v234_v24 = vld [vmem:[%s925_s28 + $0x40] sm:$0xff]  ;;  %v235_v25 = vld [vmem:[%s925_s28 + $0x48] sm:$0xff]  ;;  %v240_v26 = vld [vmem:[%s925_s28 + $0x70] sm:$0xff] }
  0x13   : > { %731 = vmatmul.msk.bf16.vlgmr.msra.gmra.mxu0 %vm270_vm0, %v242_v4  ;;  %736 = vmatmul.msk.bf16.vlgmr.msra.gmra.mxu3 %vm270_vm0, %v247_v13  ;;  %v241_v27 = vld [vmem:[%s925_s28 + $0x78] sm:$0xff]  ;;  %v246_v28 = vpack.c.bf16 %v235_v25, %v234_v24  ;;  %v775_v33 = vld [vmem:[%s1100_s3] sm:$0xff] }
  0x14   : > { %v249_v29 = vpack.c.bf16 %v241_v27, %v240_v26  ;;  %v801_v35 = vld [vmem:[%s1099_s2] ss:$0 sm:$0xff] }
  0x15   : > { %438 = vmatpush.bf16.msra.mxu1 %v780_v16  ;;  %787 = vmatpush.bf16.msra.mxu2 %v780_v16  ;;  %v802_v27 = vld [vmem:[%s1101_s4] ss:$0 sm:$0xff] }
  0x19   : > { %439 = vmatpush.bf16.msra.mxu1 %v779_v22  ;;  %788 = vmatpush.bf16.msra.mxu2 %v779_v22 }
  0x1d   : > { %440 = vmatpush.bf16.msra.mxu1 %v778_v30  ;;  %789 = vmatpush.bf16.msra.mxu2 %v778_v30 }
  0x21   : > { %441 = vmatpush.bf16.msra.mxu1 %v777_v31  ;;  %790 = vmatpush.bf16.msra.mxu2 %v777_v31 }
  0x23   : > { %732 = vmatmul.msk.bf16.gmra.mxu0 %vm270_vm0, %v243_v7  ;;  %737 = vmatmul.msk.bf16.gmra.mxu3 %vm270_vm0, %v248_v23 }
  0x25   : > { %442 = vmatpush.bf16.msra.mxu1 %v776_v32  ;;  %791 = vmatpush.bf16.msra.mxu2 %v776_v32 }
  0x29   : > { %443 = vmatpush.bf16.msra.mxu1 %v775_v33  ;;  %792 = vmatpush.bf16.msra.mxu2 %v775_v33 }
  0x33   : > { %733 = vmatmul.msk.bf16.gmra.mxu0 %vm270_vm0, %v244_v10  ;;  %738 = vmatmul.msk.bf16.gmra.mxu3 %vm270_vm0, %v249_v29 }
  0x43   : > { %734 = vmatmul.msk.bf16.gmra.mxu0 %vm270_vm0, %v245_v21 }
  0x53   : > { %735 = vmatmul.msk.bf16.gmra.mxu0 %vm270_vm0, %v246_v28 }
  0x90   : > { %v304_v34 = vpop.f32.mrf.mxu0 }
  0x91   : > { %v305_v36 = vadd.f32 %v801_v35, %v304_v34 }
  0x93   : > { %v344_v39 = vmax.f32 %v305_v36, 0.0 }
  0x96   : > { %v329_v0 = vpop.f32.mrf.mxu3 }
  0x97   : > { %v330_v9 = vadd.f32 %v801_v35, %v329_v0 }
  0x98   : > { %v306_v37 = vpop.f32.mrf.mxu0 }
  0x99   : > { %v307_v38 = vadd.f32 %v801_v35, %v306_v37  ;;  %v354_v11 = vmax.f32 %v330_v9, 0.0 }
  0x9b   : > { %v345_v40 = vmax.f32 %v307_v38, 0.0 }
  0x9d   : > { %v360_v41 = vpack.c.bf16 %v345_v40, %v344_v39 }
  0x9e   : > { %v331_v4 = vpop.f32.mrf.mxu3 }
  0x9f   : > { %444 = vmatmul.bf16.vlgmr.msra.gmra.mxu1 %v360_v41  ;;  %v332_v10 = vadd.f32 %v801_v35, %v331_v4 }
  0xa0   : > { %v309_v42 = vpop.f32.mrf.mxu0 }
  0xa1   : > { %v310_v43 = vadd.f32 %v801_v35, %v309_v42  ;;  %v355_v12 = vmax.f32 %v332_v10, 0.0 }
  0xa3   : > { %v346_v46 = vmax.f32 %v310_v43, 0.0  ;;  %v365_v13 = vpack.c.bf16 %v355_v12, %v354_v11 }
  0xa6   : > { %v334_v8 = vpop.f32.mrf.mxu3 }
  0xa7   : > { %v335_v15 = vadd.f32 %v801_v35, %v334_v8 }
  0xa8   : > { %v311_v44 = vpop.f32.mrf.mxu0 }
  0xa9   : > { %v312_v45 = vadd.f32 %v801_v35, %v311_v44  ;;  %v356_v18 = vmax.f32 %v335_v15, 0.0 }
  0xab   : > { %v347_v47 = vmax.f32 %v312_v45, 0.0 }
  0xad   : > { %v361_v48 = vpack.c.bf16 %v347_v47, %v346_v46 }
  0xae   : > { %v336_v14 = vpop.f32.mrf.mxu3 }
  0xaf   : > { %449 = vmatmul.bf16.gmra.mxu1 %v361_v48  ;;  %v337_v16 = vadd.f32 %v801_v35, %v336_v14 }
  0xb0   : > { %v314_v49 = vpop.f32.mrf.mxu0 }
  0xb1   : > { %v315_v50 = vadd.f32 %v801_v35, %v314_v49  ;;  %v357_v19 = vmax.f32 %v337_v16, 0.0 }
  0xb3   : > { %v348_v53 = vmax.f32 %v315_v50, 0.0  ;;  %v366_v20 = vpack.c.bf16 %v357_v19, %v356_v18 }
  0xb6   : > { %v339_v17 = vpop.f32.mrf.mxu3 }
  0xb7   : > { %v340_v22 = vadd.f32 %v801_v35, %v339_v17 }
  0xb8   : > { %v316_v51 = vpop.f32.mrf.mxu0 }
  0xb9   : > { %v317_v52 = vadd.f32 %v801_v35, %v316_v51  ;;  %v358_v24 = vmax.f32 %v340_v22, 0.0 }
  0xbb   : > { %v349_v54 = vmax.f32 %v317_v52, 0.0 }
  0xbd   : > { %v362_v55 = vpack.c.bf16 %v349_v54, %v348_v53 }
  0xbe   : > { %v341_v21 = vpop.f32.mrf.mxu3 }
  0xbf   : > { %454 = vmatmul.bf16.gmra.mxu1 %v362_v55  ;;  %v342_v23 = vadd.f32 %v801_v35, %v341_v21 }
  0xc0   : > { %v319_v56 = vpop.f32.mrf.mxu0 }
  0xc1   : > { %v320_v57 = vadd.f32 %v801_v35, %v319_v56  ;;  %v359_v25 = vmax.f32 %v342_v23, 0.0 }
  0xc3   : > { %v350_v60 = vmax.f32 %v320_v57, 0.0  ;;  %v367_v26 = vpack.c.bf16 %v359_v25, %v358_v24 }
  0xc8   : > { %v321_v58 = vpop.f32.mrf.mxu0 }
  0xc9   : > { %v322_v59 = vadd.f32 %v801_v35, %v321_v58 }
  0xcb   : > { %v351_v61 = vmax.f32 %v322_v59, 0.0 }
  0xcd   : > { %v363_v62 = vpack.c.bf16 %v351_v61, %v350_v60 }
  0xcf   : > { %459 = vmatmul.bf16.gmra.mxu1 %v363_v62 }
  0xd0   : > { %v324_v63 = vpop.f32.mrf.mxu0 }
  0xd1   : > { %v325_v1 = vadd.f32 %v801_v35, %v324_v63 }
  0xd3   : > { %v352_v5 = vmax.f32 %v325_v1, 0.0 }
  0xd8   : > { %v326_v2 = vpop.f32.mrf.mxu0 }
  0xd9   : > { %v327_v3 = vadd.f32 %v801_v35, %v326_v2 }
  0xdb   : > { %v353_v6 = vmax.f32 %v327_v3, 0.0 }
  0xdd   : > { %v364_v7 = vpack.c.bf16 %v353_v6, %v352_v5 }
  0xdf   : > { %464 = vmatmul.bf16.vlgmr.msra.gmra.mxu2 %v364_v7 }
  0xef   : > { %469 = vmatmul.bf16.gmra.mxu2 %v365_v13 }
  0xff   : > { %474 = vmatmul.bf16.gmra.mxu2 %v366_v20 }
 0x10f   : > { %479 = vmatmul.bf16.gmra.mxu2 %v367_v26 }
 0x11c   : > { %v445_v28 = vpop.f32.mrf.mxu1 }
 0x11d   : > { %v446_v29 = vadd.f32 %v802_v27, %v445_v28 }
 0x11f   : > { %485 = vmax.xlane.f32.xlu0 %v446_v29 }
 0x124   : > { %v447_v30 = vpop.f32.mrf.mxu1 }
 0x125   : > { %v448_v31 = vadd.f32 %v802_v27, %v447_v30 }
 0x127   : > { %487 = vmax.xlane.f32.xlu0 %v448_v31 }
 0x12c   : > { %v450_v32 = vpop.f32.mrf.mxu1 }
 0x12d   : > { %v451_v33 = vadd.f32 %v802_v27, %v450_v32 }
 0x12f   : > { %489 = vmax.xlane.f32.xlu1 %v451_v33 }
 0x134   : > { %v452_v34 = vpop.f32.mrf.mxu1 }
 0x135   : > { %v453_v36 = vadd.f32 %v802_v27, %v452_v34 }
 0x137   : > { %491 = vmax.xlane.f32.xlu1 %v453_v36 }
 0x13c   : > { %v455_v35 = vpop.f32.mrf.mxu1 }
 0x13d   : > { %v456_v37 = vadd.f32 %v802_v27, %v455_v35 }
 0x13f   : > { %493 = vmax.xlane.f32.xlu2 %v456_v37 }
 0x144   : > { %v457_v38 = vpop.f32.mrf.mxu1 }
 0x145   : > { %v981_v39 = vadd.f32 %v802_v27, %v457_v38 }
 0x147   : > { %495 = vmax.xlane.f32.xlu2 %v981_v39 }
 0x14c   : > { %v460_v40 = vpop.f32.mrf.mxu1 }
 0x14d   : > { %v984_v41 = vadd.f32 %v802_v27, %v460_v40 }
 0x14f   : > { %497 = vmax.xlane.f32.xlu0 %v984_v41 }
 0x154   : > { %v462_v42 = vpop.f32.mrf.mxu1 }
 0x155   : > { %v987_v43 = vadd.f32 %v802_v27, %v462_v42 }
 0x157   : > { %499 = vmax.xlane.f32.xlu1 %v987_v43 }
 0x162   : > { %v465_v44 = vpop.f32.mrf.mxu2 }
 0x163   : > { %v990_v45 = vadd.f32 %v802_v27, %v465_v44 }
 0x165   : > { %501 = vmax.xlane.f32.xlu2 %v990_v45 }
 0x16a   : > { %v467_v46 = vpop.f32.mrf.mxu2 }
 0x16b   : > { %v993_v47 = vadd.f32 %v802_v27, %v467_v46 }
 0x16d   : > { %503 = vmax.xlane.f32.xlu0 %v993_v47 }
 0x172   : > { %v470_v48 = vpop.f32.mrf.mxu2 }
 0x173   : > { %v996_v49 = vadd.f32 %v802_v27, %v470_v48 }
 0x175   : > { %505 = vmax.xlane.f32.xlu1 %v996_v49 }
 0x17a   : > { %v472_v50 = vpop.f32.mrf.mxu2 }
 0x17b   : > { %v999_v51 = vadd.f32 %v802_v27, %v472_v50 }
 0x17d   : > { %507 = vmax.xlane.f32.xlu2 %v999_v51 }
 0x182   : > { %v475_v52 = vpop.f32.mrf.mxu2 }
 0x183   : > { %v1002_v53 = vadd.f32 %v802_v27, %v475_v52 }
 0x185   : > { %509 = vmax.xlane.f32.xlu0 %v1002_v53 }
 0x18a   : > { %v477_v54 = vpop.f32.mrf.mxu2 }
 0x18b   : > { %v1005_v55 = vadd.f32 %v802_v27, %v477_v54 }
 0x18d   : > { %511 = vmax.xlane.f32.xlu1 %v1005_v55 }
 0x192   : > { %v480_v56 = vpop.f32.mrf.mxu2  ;;  %v486_v57 = vpop.xlane.xlu0 %485 }
 0x193   : > { %v1008_v58 = vadd.f32 %v802_v27, %v480_v56  ;;  %v517_v59 = vsub.f32 %v446_v29, %v486_v57 }
 0x195   : > { %v533_v60 = vmul.f32 1.442695, %v517_v59  ;;  %513 = vmax.xlane.f32.xlu2 %v1008_v58 }
 0x197   : > { %803 = vpow2.f32 %v533_v60 }
 0x19a   : > { %v482_v61 = vpop.f32.mrf.mxu2  ;;  %v488_v62 = vpop.xlane.xlu0 %487 }
 0x19b   : > { %v1011_v63 = vadd.f32 %v802_v27, %v482_v61  ;;  %v518_v0 = vsub.f32 %v448_v31, %v488_v62 }
 0x19d   : > { %v1013_v1 = vpop.eup %803  ;;  %v535_v2 = vmul.f32 1.442695, %v518_v0  ;;  %515 = vmax.xlane.f32.xlu0 %v1011_v63 }
 0x19e   : > { %565 = vadd.xlane.f32.xlu1 %v1013_v1 }
 0x19f   : > { %805 = vpow2.f32 %v535_v2 }
 0x1a2   : > { %v490_v3 = vpop.xlane.xlu1 %489 }
 0x1a3   : > { %v519_v4 = vsub.f32 %v451_v33, %v490_v3 }
 0x1a5   : > { %v1017_v5 = vpop.eup %805  ;;  %v537_v6 = vmul.f32 1.442695, %v519_v4 }
 0x1a6   : > { %567 = vadd.xlane.f32.xlu2 %v1017_v5 }
 0x1a7   : > { %807 = vpow2.f32 %v537_v6 }
 0x1aa   : > { %v492_v7 = vpop.xlane.xlu1 %491 }
 0x1ab   : > { %v520_v8 = vsub.f32 %v453_v36, %v492_v7 }
 0x1ad   : > { %v1020_v9 = vpop.eup %807  ;;  %v539_v10 = vmul.f32 1.442695, %v520_v8 }
 0x1ae   : > { %569 = vadd.xlane.f32.xlu0 %v1020_v9 }
 0x1af   : > { %809 = vpow2.f32 %v539_v10 }
 0x1b2   : > { %v494_v11 = vpop.xlane.xlu2 %493 }
 0x1b3   : > { %v521_v12 = vsub.f32 %v456_v37, %v494_v11 }
 0x1b5   : > { %v1023_v13 = vpop.eup %809  ;;  %v541_v14 = vmul.f32 1.442695, %v521_v12 }
 0x1b6   : > { %571 = vadd.xlane.f32.xlu1 %v1023_v13 }
 0x1b7   : > { %811 = vpow2.f32 %v541_v14 }
 0x1ba   : > { %v496_v15 = vpop.xlane.xlu2 %495 }
 0x1bb   : > { %v522_v16 = vsub.f32 %v981_v39, %v496_v15 }
 0x1bd   : > { %v1027_v17 = vpop.eup %811  ;;  %v543_v18 = vmul.f32 1.442695, %v522_v16 }
 0x1be   : > { %573 = vadd.xlane.f32.xlu2 %v1027_v17 }
 0x1bf   : > { %813 = vpow2.f32 %v543_v18 }
 0x1c2   : > { %v498_v19 = vpop.xlane.xlu0 %497 }
 0x1c3   : > { %v523_v20 = vsub.f32 %v984_v41, %v498_v19 }
 0x1c5   : > { %v1031_v21 = vpop.eup %813  ;;  %v545_v22 = vmul.f32 1.442695, %v523_v20 }
 0x1c6   : > { %575 = vadd.xlane.f32.xlu0 %v1031_v21 }
 0x1c7   : > { %815 = vpow2.f32 %v545_v22 }
 0x1ca   : > { %v500_v23 = vpop.xlane.xlu1 %499 }
 0x1cb   : > { %v524_v24 = vsub.f32 %v987_v43, %v500_v23 }
 0x1cd   : > { %v1035_v25 = vpop.eup %815  ;;  %v547_v26 = vmul.f32 1.442695, %v524_v24 }
 0x1ce   : > { %577 = vadd.xlane.f32.xlu1 %v1035_v25 }
 0x1cf   : > { %817 = vpow2.f32 %v547_v26 }
 0x1d5   : > { %v1038_v27 = vpop.eup %817 }
 0x1d6   : > { %579 = vadd.xlane.f32.xlu2 %v1038_v27 }
 0x1d8   : > { %v502_v28 = vpop.xlane.xlu2 %501 }
 0x1d9   : > { %v525_v29 = vsub.f32 %v990_v45, %v502_v28 }
 0x1db   : > { %v549_v30 = vmul.f32 1.442695, %v525_v29 }
 0x1dd   : > { %819 = vpow2.f32 %v549_v30 }
 0x1e0   : > { %v504_v31 = vpop.xlane.xlu0 %503 }
 0x1e1   : > { %v526_v32 = vsub.f32 %v993_v47, %v504_v31 }
 0x1e3   : > { %v1043_v33 = vpop.eup %819  ;;  %v551_v34 = vmul.f32 1.442695, %v526_v32 }
 0x1e4   : > { %581 = vadd.xlane.f32.xlu0 %v1043_v33 }
 0x1e5   : > { %821 = vpow2.f32 %v551_v34 }
 0x1e8   : > { %v506_v36 = vpop.xlane.xlu1 %505 }
 0x1e9   : > { %v527_v35 = vsub.f32 %v996_v49, %v506_v36 }
 0x1eb   : > { %v1047_v37 = vpop.eup %821  ;;  %v553_v38 = vmul.f32 1.442695, %v527_v35 }
 0x1ec   : > { %583 = vadd.xlane.f32.xlu1 %v1047_v37 }
 0x1ed   : > { %823 = vpow2.f32 %v553_v38 }
 0x1f0   : > { %v508_v39 = vpop.xlane.xlu2 %507 }
 0x1f1   : > { %v528_v40 = vsub.f32 %v999_v51, %v508_v39 }
 0x1f3   : > { %v1051_v41 = vpop.eup %823  ;;  %v555_v42 = vmul.f32 1.442695, %v528_v40 }
 0x1f4   : > { %585 = vadd.xlane.f32.xlu2 %v1051_v41 }
 0x1f5   : > { %825 = vpow2.f32 %v555_v42 }
 0x1f8   : > { %v510_v43 = vpop.xlane.xlu0 %509 }
 0x1f9   : > { %v529_v44 = vsub.f32 %v1002_v53, %v510_v43 }
 0x1fb   : > { %v1055_v45 = vpop.eup %825  ;;  %v557_v46 = vmul.f32 1.442695, %v529_v44 }
 0x1fc   : > { %587 = vadd.xlane.f32.xlu0 %v1055_v45 }
 0x1fd   : > { %827 = vpow2.f32 %v557_v46 }
 0x200   : > { %v512_v47 = vpop.xlane.xlu1 %511 }
 0x201   : > { %v530_v48 = vsub.f32 %v1005_v55, %v512_v47 }
 0x203   : > { %v1059_v49 = vpop.eup %827  ;;  %v559_v50 = vmul.f32 1.442695, %v530_v48 }
 0x204   : > { %589 = vadd.xlane.f32.xlu1 %v1059_v49 }
 0x205   : > { %829 = vpow2.f32 %v559_v50 }
 0x208   : > { %v514_v51 = vpop.xlane.xlu2 %513 }
 0x209   : > { %v531_v52 = vsub.f32 %v1008_v58, %v514_v51 }
 0x20b   : > { %v1063_v54 = vpop.eup %829  ;;  %v561_v53 = vmul.f32 1.442695, %v531_v52 }
 0x20c   : > { %591 = vadd.xlane.f32.xlu2 %v1063_v54 }
 0x20d   : > { %831 = vpow2.f32 %v561_v53 }
 0x210   : > { %v516_v56 = vpop.xlane.xlu0 %515 }
 0x211   : > { %v532_v57 = vsub.f32 %v1011_v63, %v516_v56  ;;  %v566_v58 = vpop.xlane.xlu1 %565 }
 0x213   : > { %v1067_v59 = vpop.eup %831  ;;  %v563_v55 = vmul.f32 1.442695, %v532_v57 }
 0x214   : > { %593 = vadd.xlane.f32.xlu0 %v1067_v59 }
 0x215   : > { %833 = vpow2.f32 %v563_v55 }
 0x216   : > { %835 = vrcp.f32 %v566_v58 }
 0x219   : > { %v568_v61 = vpop.xlane.xlu2 %567 }
 0x21a   : > { %837 = vrcp.f32 %v568_v61 }
 0x21b   : > { %v1070_v60 = vpop.eup %833 }
 0x21c   : > { %595 = vadd.xlane.f32.xlu1 %v1070_v60  ;;  %v836_v62 = vpop.eup %835 }
 0x21d   : > { %v613_v0 = vmul.f32 %v836_v62, %v1013_v1 }
 0x220   : > { %v838_v63 = vpop.eup %837 }
 0x221   : > { %v570_v2 = vpop.xlane.xlu0 %569  ;;  %v614_v3 = vmul.f32 %v838_v63, %v1017_v5 }
 0x222   : > { %839 = vrcp.f32 %v570_v2 }
 0x228   : > { %v840_v6 = vpop.eup %839 }
 0x229   : > { %v572_v4 = vpop.xlane.xlu1 %571  ;;  %v615_v7 = vmul.f32 %v840_v6, %v1020_v9 }
 0x22a   : > { %841 = vrcp.f32 %v572_v4 }
 0x230   : > { %v842_v10 = vpop.eup %841 }
 0x231   : > { %v574_v8 = vpop.xlane.xlu2 %573  ;;  %v616_v11 = vmul.f32 %v842_v10, %v1023_v13 }
 0x232   : > { %843 = vrcp.f32 %v574_v8 }
 0x235   : > { %629 = vxpose.xlu2.b32.start [1/16] (narrow) %v613_v0, 8 }
 0x238   : > { %v844_v12 = vpop.eup %843 }
 0x239   : > { %v576_v1 = vpop.xlane.xlu0 %575  ;;  %v617_v14 = vmul.f32 %v844_v12, %v1027_v17 }
 0x23a   : > { %845 = vrcp.f32 %v576_v1 }
 0x23d   : > { %630 = vxpose.xlu2.b32.cont [2/16] (narrow) %v614_v3, 8 }
 0x240   : > { %v846_v15 = vpop.eup %845 }
 0x241   : > { %v578_v5 = vpop.xlane.xlu1 %577  ;;  %v618_v16 = vmul.f32 %v846_v15, %v1031_v21 }
 0x242   : > { %847 = vrcp.f32 %v578_v5 }
 0x245   : > { %631 = vxpose.xlu2.b32.cont [3/16] (narrow) %v615_v7, 8 }
 0x248   : > { %v848_v18 = vpop.eup %847 }
 0x249   : > { %v580_v9 = vpop.xlane.xlu2 %579  ;;  %v619_v19 = vmul.f32 %v848_v18, %v1035_v25 }
 0x24a   : > { %849 = vrcp.f32 %v580_v9 }
 0x24d   : > { %632 = vxpose.xlu2.b32.cont [4/16] (narrow) %v616_v11, 8 }
 0x250   : > { %v850_v20 = vpop.eup %849 }
 0x251   : > { %v620_v22 = vmul.f32 %v850_v20, %v1038_v27 }
 0x255   : > { %633 = vxpose.xlu2.b32.cont [5/16] (narrow) %v617_v14, 8 }
 0x257   : > { %v582_v13 = vpop.xlane.xlu0 %581 }
 0x258   : > { %851 = vrcp.f32 %v582_v13 }
 0x25d   : > { %634 = vxpose.xlu2.b32.cont [6/16] (narrow) %v618_v16, 8 }
 0x25e   : > { %v852_v23 = vpop.eup %851 }
 0x25f   : > { %v584_v17 = vpop.xlane.xlu1 %583  ;;  %v621_v24 = vmul.f32 %v852_v23, %v1043_v33 }
 0x260   : > { %853 = vrcp.f32 %v584_v17 }
 0x265   : > { %635 = vxpose.xlu2.b32.cont [7/16] (narrow) %v619_v19, 8 }
 0x266   : > { %v854_v26 = vpop.eup %853 }
 0x267   : > { %v586_v21 = vpop.xlane.xlu2 %585  ;;  %v622_v28 = vmul.f32 %v854_v26, %v1047_v37 }
 0x268   : > { %855 = vrcp.f32 %v586_v21 }
 0x26d   : > { %636 = vxpose.xlu2.b32.cont [8/16] (narrow) %v620_v22, 8 }
 0x26e   : > { %v856_v29 = vpop.eup %855 }
 0x26f   : > { %v588_v25 = vpop.xlane.xlu0 %587  ;;  %v623_v30 = vmul.f32 %v856_v29, %v1051_v41 }
 0x270   : > { %857 = vrcp.f32 %v588_v25 }
 0x275   : > { %637 = vxpose.xlu2.b32.cont [9/16] (narrow) %v621_v24, 8 }
 0x276   : > { %v858_v31 = vpop.eup %857 }
 0x277   : > { %v590_v27 = vpop.xlane.xlu1 %589  ;;  %v624_v32 = vmul.f32 %v858_v31, %v1055_v45 }
 0x278   : > { %859 = vrcp.f32 %v590_v27 }
 0x27d   : > { %638 = vxpose.xlu2.b32.cont [10/16] (narrow) %v622_v28, 8 }
 0x27e   : > { %v860_v34 = vpop.eup %859 }
 0x27f   : > { %v592_v33 = vpop.xlane.xlu2 %591  ;;  %v625_v36 = vmul.f32 %v860_v34, %v1059_v49 }
 0x280   : > { %861 = vrcp.f32 %v592_v33 }
 0x285   : > { %639 = vxpose.xlu2.b32.cont [11/16] (narrow) %v623_v30, 8 }
 0x286   : > { %v862_v37 = vpop.eup %861 }
 0x287   : > { %v594_v35 = vpop.xlane.xlu0 %593  ;;  %v626_v38 = vmul.f32 %v862_v37, %v1063_v54 }
 0x288   : > { %863 = vrcp.f32 %v594_v35 }
 0x28d   : > { %640 = vxpose.xlu2.b32.cont [12/16] (narrow) %v624_v32, 8 }
 0x28e   : > { %v864_v40 = vpop.eup %863 }
 0x28f   : > { %v596_v39 = vpop.xlane.xlu1 %595  ;;  %v627_v41 = vmul.f32 %v864_v40, %v1067_v59 }
 0x290   : > { %865 = vrcp.f32 %v596_v39 }
 0x295   : > { %641 = vxpose.xlu2.b32.cont [13/16] (narrow) %v625_v36, 8 }
 0x296   : > { %v866_v42 = vpop.eup %865 }
 0x297   : > { %v628_v43 = vmul.f32 %v866_v42, %v1070_v60 }
 0x29d   : > { %642 = vxpose.xlu2.b32.cont [14/16] (narrow) %v626_v38, 8 }
 0x2a5   : > { %643 = vxpose.xlu2.b32.cont [15/16] (narrow) %v627_v41, 8 }
 0x2ad   : > { %644 = vxpose.xlu2.b32.end [16/16] (narrow) %v628_v43, 8 }
 0x2ce   : > { %v645_v44 = vpop.trf.xlu2 }
 0x2cf   : > { %661 = vst [vmem:[%s224_s29] sm:$0xff] %v645_v44 }
 0x2d0 PF: > { %s15_s18 = sadd.s32 1, %s873_s18  }
 0x2d1   : > { %p12_p5 = scmp.ge.s32.totalorder %s15_s18, 4  }
 0x2d3   :  { %14 = sbr.rel (!%p12_p5) target bundleno = 1 (0x1), region = 70 }

</bundles_post_ra>
